<compile_context>
chip_gen: v7x
topology: tpu7x:2x2x1
jax: 0.10.0
libtpu: 0.0.40
codegen_flags: <defaults>
</compile_context>

<pallas_src>
import functools

import jax
import jax.numpy as jnp
from jax.experimental import pallas as pl
from jax.experimental.pallas import tpu as pltpu


def _round_up(x, m):
    return ((x + m - 1) // m) * m


@functools.lru_cache(maxsize=None)
def _vmem_limit_bytes():
    """Per-generation VMEM limit: chip capacity minus compiler-scratch headroom."""
    cap = 64 * 1024 * 1024  # conservative fallback (v7x-sized per-TC VMEM)
    try:
        cap = int(pltpu.get_tpu_info().vmem_capacity_bytes)
    except Exception:
        pass
    return max(cap - 16 * 1024 * 1024, 32 * 1024 * 1024)


# -----------------------------------------------------------------------------
# Kernel
# -----------------------------------------------------------------------------
def chebykan_kernel(x_ref, w_ref, b_ref, o_ref, slab_ref, *, degree, in_dim):
    # x_ref:    (TB, IN)            one batch tile
    # w_ref:    (degree*IN, T_OUT)  coefficient tile, d-major rows (d = 1..degree)
    # b_ref:    (1, T_OUT)          precomputed T_0 contribution (column sums)
    # o_ref:    (TB, T_OUT)
    # slab_ref: (TB, degree*IN)     f32 VMEM scratch slab [T_1 | T_2 | ... | T_D]
    t = jnp.tanh(x_ref[...].astype(jnp.float32))

    # Chebyshev recurrence T_1 .. T_degree streamed into the scratch slab.
    # Only t_prev / t_cur stay live in vregs; recurrence is kept in f32 even
    # when the MXU weights are bf16.
    slab_ref[:, 0:in_dim] = t
    t_prev, t_cur = jnp.ones_like(t), t
    for d in range(2, degree + 1):
        t_next = 2.0 * t * t_cur - t_prev
        slab_ref[:, (d - 1) * in_dim : d * in_dim] = t_next
        t_prev, t_cur = t_cur, t_next

    acc = jnp.dot(
        slab_ref[...].astype(w_ref.dtype), w_ref[...],
        preferred_element_type=jnp.float32,
    )
    o_ref[...] = (acc + b_ref[...]).astype(o_ref.dtype)


# -----------------------------------------------------------------------------
# One-time parameter re-layout (do this OUTSIDE the per-step forward)
# -----------------------------------------------------------------------------
def prepare_chebykan_params(cheby_coeffs, *, out_align=128, mxu_dtype=jnp.bfloat16):
    """cheby_coeffs: (input_dim, output_dim, degree+1)  -- PyTorch layout.

    Returns:
      w:    (degree*input_dim, out_pad)  rows ordered d-major (d = 1..degree),
                                         OUT zero-padded to a multiple of
                                         out_align, cast to mxu_dtype (bf16
                                         default: MXU-native, half the VMEM).
      bias: (1, out_pad) float32         sum_i C[i, :, 0]  (the T_0 == 1 term).
    """
    in_dim, out_dim, deg_p1 = cheby_coeffs.shape
    degree = deg_p1 - 1
    out_pad = _round_up(out_dim, out_align)

    bias = jnp.sum(cheby_coeffs[:, :, 0].astype(jnp.float32), axis=0)      # (OUT,)
    w = jnp.transpose(cheby_coeffs[:, :, 1:], (2, 0, 1))                   # (D, IN, OUT)
    w = w.reshape(degree * in_dim, out_dim)

    if out_pad != out_dim:
        w = jnp.pad(w, ((0, 0), (0, out_pad - out_dim)))
        bias = jnp.pad(bias, (0, out_pad - out_dim))

    return w.astype(mxu_dtype), bias.reshape(1, out_pad).astype(jnp.float32)


# -----------------------------------------------------------------------------
# Forward wrapper
# -----------------------------------------------------------------------------
@functools.partial(
    jax.jit,
    static_argnames=("degree", "out_dim", "block_b", "single_buffer_resident"),
)
def chebykan_forward(x, w, bias, *, degree, out_dim, block_b=512,
                     single_buffer_resident=True):
    """x: (..., input_dim); w/bias from prepare_chebykan_params(). Returns (B, out_dim)."""
    in_dim = x.shape[-1]
    x2 = x.reshape(-1, in_dim)
    B = x2.shape[0]
    out_pad = bias.shape[-1]

    if degree == 0:
        # Degenerate case: y is the bias broadcast over the batch.
        return jnp.broadcast_to(bias[:, :out_dim], (B, out_dim)).astype(x.dtype)

    assert w.shape[0] == degree * in_dim, "weights do not match input_dim/degree"

    # --- Batch tiling: large tiles, but guarantee >= 2 grid steps when B > 8
    #     so the "parallel" batch axis can be sharded across v7x's 2 TensorCores.
    tb = min(block_b, _round_up(B, 8))
    if B > 8:
        tb = min(tb, _round_up((B + 1) // 2, 8))
    tb = _round_up(tb, 8)
    b_pad = _round_up(B, tb)
    if b_pad != B:
        x2 = jnp.pad(x2, ((0, b_pad - B), (0, 0)))
    n_b = b_pad // tb

    # --- OUT tiling: keep the weight fully resident when it fits ~1/3 of VMEM,
    #     otherwise stream OUT tiles (multiples of 128 that divide out_pad) so
    #     the weight DMA overlaps the matmul via default double-buffering.
    vmem_limit = _vmem_limit_bytes()
    w_itemsize = w.dtype.itemsize
    weight_budget = max(vmem_limit // 3, 8 * 1024 * 1024)
    t_out = out_pad
    if degree * in_dim * out_pad * w_itemsize > weight_budget:
        lanes = out_pad // 128
        t_out = 128
        for d in range(lanes, 0, -1):
            if lanes % d == 0 and degree * in_dim * (128 * d) * w_itemsize <= weight_budget:
                t_out = 128 * d
                break
    n_o = out_pad // t_out

    # Resident weight/bias (constant index map across the whole grid): request
    # single buffering to halve their VMEM footprint (matters most on v7x).
    w_spec_kwargs, b_spec_kwargs = {}, {}
    if n_o == 1 and single_buffer_resident and hasattr(pl, "Buffered"):
        w_spec_kwargs = dict(pipeline_mode=pl.Buffered(1))
        b_spec_kwargs = dict(pipeline_mode=pl.Buffered(1))

    grid = (n_b, n_o)

    y = pl.pallas_call(
        functools.partial(chebykan_kernel, degree=degree, in_dim=in_dim),
        out_shape=jax.ShapeDtypeStruct((b_pad, out_pad), x.dtype),
        grid_spec=pltpu.PrefetchScalarGridSpec(
            num_scalar_prefetch=0,
            grid=grid,
            in_specs=[
                pl.BlockSpec((tb, in_dim), lambda i, j: (i, 0)),
                pl.BlockSpec((degree * in_dim, t_out), lambda i, j: (0, j),
                             **w_spec_kwargs),
                pl.BlockSpec((1, t_out), lambda i, j: (0, j), **b_spec_kwargs),
            ],
            out_specs=pl.BlockSpec((tb, t_out), lambda i, j: (i, j)),
            scratch_shapes=[pltpu.VMEM((tb, degree * in_dim), jnp.float32)],
        ),
        compiler_params=pltpu.CompilerParams(
            dimension_semantics=("parallel", "parallel"),
            vmem_limit_bytes=vmem_limit,
        ),
    )(x2, w, bias)

    # TODO(synk): for OUT << 128, a downstream consumer could take the padded
    # (b_pad, out_pad) slab directly (and/or a bf16 out dtype) to avoid this
    # extra HBM read+write pass.
    return y[:B, :out_dim]


# -----------------------------------------------------------------------------
# Pure-JAX reference (mirrors the PyTorch forward exactly: tanh -> acos -> cos)
# -----------------------------------------------------------------------------
def chebykan_reference(x, cheby_coeffs):
    input_dim, output_dim, deg_p1 = cheby_coeffs.shape
    t = jnp.tanh(x).reshape(-1, input_dim, 1)
    t = jnp.broadcast_to(t, (t.shape[0], input_dim, deg_p1))
    theta = jnp.arccos(t)
    theta = theta * jnp.arange(deg_p1, dtype=x.dtype)
    feats = jnp.cos(theta)
    y = jnp.einsum("bid,iod->bo", feats, cheby_coeffs)
    return y.reshape(-1, output_dim)


if __name__ == "__main__":
    # Small deterministic setup consistent with the module; batch deliberately
    # not a multiple of the tile to exercise the padding path.
    batch = 200
    input_dim = 32
    output_dim = 32
    degree = 3

    key = jax.random.PRNGKey(0)
    kx, kw = jax.random.split(key)

    x = jax.random.normal(kx, (batch, input_dim), dtype=jnp.float32)
    # nn.init.normal_(mean=0, std=1/(input_dim*(degree+1)))
    std = 1.0 / (input_dim * (degree + 1))
    cheby_coeffs = std * jax.random.normal(
        kw, (input_dim, output_dim, degree + 1), dtype=jnp.float32
    )

    y_ref = chebykan_reference(x, cheby_coeffs)

    def run(w, bias, single_buffer):
        return jax.block_until_ready(
            chebykan_forward(x, w, bias, degree=degree, out_dim=output_dim,
                             single_buffer_resident=single_buffer)
        )

    # f32 weights: the recurrence must match the acos/cos reference tightly.
    w32, b32 = prepare_chebykan_params(cheby_coeffs, mxu_dtype=jnp.float32)
    single_buffer = True
    try:
        y32 = run(w32, b32, single_buffer)
    except Exception:
        # Fallback if pipeline_mode=pl.Buffered(1) is rejected by this build.
        single_buffer = False
        y32 = run(w32, b32, single_buffer)
    assert y32.shape == (batch, output_dim)
    assert jnp.allclose(y32, y_ref, atol=1e-4, rtol=1e-4), "f32 mismatch vs reference"

    # bf16 weights (default, MXU-native): looser tolerance, f32 accumulation.
    wbf, bbf = prepare_chebykan_params(cheby_coeffs)  # mxu_dtype=bf16 default
    ybf = run(wbf, bbf, single_buffer)
    assert ybf.shape == (batch, output_dim)
    assert jnp.allclose(ybf, y_ref, atol=5e-3, rtol=2e-2), "bf16 mismatch vs reference"

    print("KERNEL_OK")
</pallas_src>

<mosaic_0001>
module attributes {stable_mosaic.version = 11 : i64} {
  func.func @chebykan_kernel(%arg0: i32, %arg1: i32, %arg2: memref<104x32xf32, #tpu.memory_space<vmem>>, %arg3: memref<96x128xf32, #tpu.memory_space<vmem>>, %arg4: memref<1x128xf32, #tpu.memory_space<vmem>>, %arg5: memref<104x128xf32, #tpu.memory_space<vmem>>, %arg6: memref<104x96xf32, #tpu.memory_space<vmem>>) attributes {dimension_semantics = [#tpu.dimension_semantics<parallel>, #tpu.dimension_semantics<parallel>], iteration_bounds = array<i64: 2, 1>, scalar_prefetch = 0 : i64, scratch_operands = 1 : i64, tpu.core_type = #tpu.core_type<tc>, window_params = [{transform_indices = @transform_0, window_bounds = array<i64: 104, 32>}, {pipeline_mode = #tpu.pipeline_mode<synchronous>, transform_indices = @transform_1, window_bounds = array<i64: 96, 128>}, {pipeline_mode = #tpu.pipeline_mode<synchronous>, transform_indices = @transform_2, window_bounds = array<i64: 1, 128>}, {transform_indices = @transform_3, window_bounds = array<i64: 104, 128>}]} {
    %c0 = arith.constant 0 : index
    %c0_0 = arith.constant 0 : index
    %0 = vector.load %arg2[%c0, %c0_0] : memref<104x32xf32, #tpu.memory_space<vmem>>, vector<104x32xf32>
    %1 = math.tanh %0 : vector<104x32xf32>
    %c0_1 = arith.constant 0 : index
    %c0_2 = arith.constant 0 : index
    %2 = vector.load %arg6[%c0_1, %c0_2] : memref<104x96xf32, #tpu.memory_space<vmem>>, vector<104x32xf32>
    tpu.vector_store %arg6[%c0_1, %c0_2], %1 {strides = array<i32>} : memref<104x96xf32, #tpu.memory_space<vmem>>, vector<104x32xf32>,
    %cst = arith.constant 1.000000e+00 : f32
    %3 = vector.broadcast %cst : f32 to vector<104x32xf32>
    %cst_3 = arith.constant 2.000000e+00 : f32
    %4 = vector.broadcast %cst_3 : f32 to vector<104x32xf32>
    %5 = arith.mulf %4, %1 : vector<104x32xf32>
    %6 = arith.mulf %5, %1 : vector<104x32xf32>
    %7 = arith.subf %6, %3 : vector<104x32xf32>
    %c0_4 = arith.constant 0 : index
    %c32 = arith.constant 32 : index
    %8 = vector.load %arg6[%c0_4, %c32] : memref<104x96xf32, #tpu.memory_space<vmem>>, vector<104x32xf32>
    tpu.vector_store %arg6[%c0_4, %c32], %7 {strides = array<i32>} : memref<104x96xf32, #tpu.memory_space<vmem>>, vector<104x32xf32>,
    %cst_5 = arith.constant 2.000000e+00 : f32
    %9 = vector.broadcast %cst_5 : f32 to vector<104x32xf32>
    %10 = arith.mulf %9, %1 : vector<104x32xf32>
    %11 = arith.mulf %10, %7 : vector<104x32xf32>
    %12 = arith.subf %11, %1 : vector<104x32xf32>
    %c0_6 = arith.constant 0 : index
    %c64 = arith.constant 64 : index
    %13 = vector.load %arg6[%c0_6, %c64] : memref<104x96xf32, #tpu.memory_space<vmem>>, vector<104x32xf32>
    tpu.vector_store %arg6[%c0_6, %c64], %12 {strides = array<i32>} : memref<104x96xf32, #tpu.memory_space<vmem>>, vector<104x32xf32>,
    %c0_7 = arith.constant 0 : index
    %c0_8 = arith.constant 0 : index
    %14 = vector.load %arg6[%c0_7, %c0_8] : memref<104x96xf32, #tpu.memory_space<vmem>>, vector<104x96xf32>
    %c0_9 = arith.constant 0 : index
    %c0_10 = arith.constant 0 : index
    %15 = vector.load %arg3[%c0_9, %c0_10] : memref<96x128xf32, #tpu.memory_space<vmem>>, vector<96x128xf32>
    %cst_11 = arith.constant dense<0.000000e+00> : vector<104x128xf32>
    %16 = tpu.matmul %14, %15, %cst_11 {dimension_numbers = #tpu.dot_dimension_numbers<[1], [0], [0], [1], [0, 0, 1, 1], [], []>} : vector<104x96xf32>, vector<96x128xf32>, vector<104x128xf32> -> vector<104x128xf32>
    %c0_12 = arith.constant 0 : index
    %c0_13 = arith.constant 0 : index
    %17 = vector.load %arg4[%c0_12, %c0_13] : memref<1x128xf32, #tpu.memory_space<vmem>>, vector<1x128xf32>
    %18 = vector.broadcast %17 : vector<1x128xf32> to vector<104x128xf32>
    %19 = arith.addf %16, %18 : vector<104x128xf32>
    %c0_14 = arith.constant 0 : index
    %c0_15 = arith.constant 0 : index
    %20 = vector.load %arg5[%c0_14, %c0_15] : memref<104x128xf32, #tpu.memory_space<vmem>>, vector<104x128xf32>
    tpu.vector_store %arg5[%c0_14, %c0_15], %19 {strides = array<i32>} : memref<104x128xf32, #tpu.memory_space<vmem>>, vector<104x128xf32>,
    return
  }
  func.func @transform_0(%arg0: i32, %arg1: i32) -> (i32, i32) {
    %c0_i32 = arith.constant 0 : i32
    %c0_i32_0 = arith.constant 0 : i32
    return %arg0, %c0_i32 : i32, i32
  }
  func.func @transform_1(%arg0: i32, %arg1: i32) -> (i32, i32) {
    %c0_i32 = arith.constant 0 : i32
    %c0_i32_0 = arith.constant 0 : i32
    return %c0_i32, %arg1 : i32, i32
  }
  func.func @transform_2(%arg0: i32, %arg1: i32) -> (i32, i32) {
    %c0_i32 = arith.constant 0 : i32
    %c0_i32_0 = arith.constant 0 : i32
    return %c0_i32, %arg1 : i32, i32
  }
  func.func @transform_3(%arg0: i32, %arg1: i32) -> (i32, i32) {
    %c0_i32 = arith.constant 0 : i32
    return %arg0, %arg1 : i32, i32
  }
}

module attributes {stable_mosaic.version = 11 : i64} {
  func.func @chebykan_kernel(%arg0: i32, %arg1: i32, %arg2: memref<104x32xf32, #tpu.memory_space<vmem>>, %arg3: memref<96x128xf32, #tpu.memory_space<vmem>>, %arg4: memref<1x128xf32, #tpu.memory_space<vmem>>, %arg5: memref<104x128xf32, #tpu.memory_space<vmem>>, %arg6: memref<104x96xf32, #tpu.memory_space<vmem>>) attributes {dimension_semantics = [#tpu.dimension_semantics<parallel>, #tpu.dimension_semantics<parallel>], iteration_bounds = array<i64: 2, 1>, scalar_prefetch = 0 : i64, scratch_operands = 1 : i64, tpu.core_type = #tpu.core_type<tc>, window_params = [{transform_indices = @transform_0, window_bounds = array<i64: 104, 32>}, {transform_indices = @transform_1, window_bounds = array<i64: 96, 128>}, {transform_indices = @transform_2, window_bounds = array<i64: 1, 128>}, {transform_indices = @transform_3, window_bounds = array<i64: 104, 128>}]} {
    %c0 = arith.constant 0 : index
    %c0_0 = arith.constant 0 : index
    %0 = vector.load %arg2[%c0, %c0_0] : memref<104x32xf32, #tpu.memory_space<vmem>>, vector<104x32xf32>
    %1 = math.tanh %0 : vector<104x32xf32>
    %c0_1 = arith.constant 0 : index
    %c0_2 = arith.constant 0 : index
    %2 = vector.load %arg6[%c0_1, %c0_2] : memref<104x96xf32, #tpu.memory_space<vmem>>, vector<104x32xf32>
    tpu.vector_store %arg6[%c0_1, %c0_2], %1 {strides = array<i32>} : memref<104x96xf32, #tpu.memory_space<vmem>>, vector<104x32xf32>,
    %cst = arith.constant 1.000000e+00 : f32
    %3 = vector.broadcast %cst : f32 to vector<104x32xf32>
    %cst_3 = arith.constant 2.000000e+00 : f32
    %4 = vector.broadcast %cst_3 : f32 to vector<104x32xf32>
    %5 = arith.mulf %4, %1 : vector<104x32xf32>
    %6 = arith.mulf %5, %1 : vector<104x32xf32>
    %7 = arith.subf %6, %3 : vector<104x32xf32>
    %c0_4 = arith.constant 0 : index
    %c32 = arith.constant 32 : index
    %8 = vector.load %arg6[%c0_4, %c32] : memref<104x96xf32, #tpu.memory_space<vmem>>, vector<104x32xf32>
    tpu.vector_store %arg6[%c0_4, %c32], %7 {strides = array<i32>} : memref<104x96xf32, #tpu.memory_space<vmem>>, vector<104x32xf32>,
    %cst_5 = arith.constant 2.000000e+00 : f32
    %9 = vector.broadcast %cst_5 : f32 to vector<104x32xf32>
    %10 = arith.mulf %9, %1 : vector<104x32xf32>
    %11 = arith.mulf %10, %7 : vector<104x32xf32>
    %12 = arith.subf %11, %1 : vector<104x32xf32>
    %c0_6 = arith.constant 0 : index
    %c64 = arith.constant 64 : index
    %13 = vector.load %arg6[%c0_6, %c64] : memref<104x96xf32, #tpu.memory_space<vmem>>, vector<104x32xf32>
    tpu.vector_store %arg6[%c0_6, %c64], %12 {strides = array<i32>} : memref<104x96xf32, #tpu.memory_space<vmem>>, vector<104x32xf32>,
    %c0_7 = arith.constant 0 : index
    %c0_8 = arith.constant 0 : index
    %14 = vector.load %arg6[%c0_7, %c0_8] : memref<104x96xf32, #tpu.memory_space<vmem>>, vector<104x96xf32>
    %c0_9 = arith.constant 0 : index
    %c0_10 = arith.constant 0 : index
    %15 = vector.load %arg3[%c0_9, %c0_10] : memref<96x128xf32, #tpu.memory_space<vmem>>, vector<96x128xf32>
    %cst_11 = arith.constant dense<0.000000e+00> : vector<104x128xf32>
    %16 = tpu.matmul %14, %15, %cst_11 {dimension_numbers = #tpu.dot_dimension_numbers<[1], [0], [0], [1], [0, 0, 1, 1], [], []>} : vector<104x96xf32>, vector<96x128xf32>, vector<104x128xf32> -> vector<104x128xf32>
    %c0_12 = arith.constant 0 : index
    %c0_13 = arith.constant 0 : index
    %17 = vector.load %arg4[%c0_12, %c0_13] : memref<1x128xf32, #tpu.memory_space<vmem>>, vector<1x128xf32>
    %18 = vector.broadcast %17 : vector<1x128xf32> to vector<104x128xf32>
    %19 = arith.addf %16, %18 : vector<104x128xf32>
    %c0_14 = arith.constant 0 : index
    %c0_15 = arith.constant 0 : index
    %20 = vector.load %arg5[%c0_14, %c0_15] : memref<104x128xf32, #tpu.memory_space<vmem>>, vector<104x128xf32>
    tpu.vector_store %arg5[%c0_14, %c0_15], %19 {strides = array<i32>} : memref<104x128xf32, #tpu.memory_space<vmem>>, vector<104x128xf32>,
    return
  }
  func.func @transform_0(%arg0: i32, %arg1: i32) -> (i32, i32) {
    %c0_i32 = arith.constant 0 : i32
    %c0_i32_0 = arith.constant 0 : i32
    return %arg0, %c0_i32 : i32, i32
  }
  func.func @transform_1(%arg0: i32, %arg1: i32) -> (i32, i32) {
    %c0_i32 = arith.constant 0 : i32
    %c0_i32_0 = arith.constant 0 : i32
    return %c0_i32, %arg1 : i32, i32
  }
  func.func @transform_2(%arg0: i32, %arg1: i32) -> (i32, i32) {
    %c0_i32 = arith.constant 0 : i32
    %c0_i32_0 = arith.constant 0 : i32
    return %c0_i32, %arg1 : i32, i32
  }
  func.func @transform_3(%arg0: i32, %arg1: i32) -> (i32, i32) {
    %c0_i32 = arith.constant 0 : i32
    return %arg0, %arg1 : i32, i32
  }
}

</mosaic_0001>

<bundles_post_ra>
// kernel: chebykan_forward.1
= control target key start
LH: loop header
LB: loop body
LE: loop exit
PB: predicated region body
PF: predicated region fallthrough
CT: control target
= control target key end

     0   :  { %s1039_s12 = smov 0   ;;  %s1041_s13 = smov 0   ;;  %s1378_s0 = inlined_call_operand.vmem [shape: f32[208,32], index: 0, kind: input, shape index: {}]   ;;  %s1379_s1 = inlined_call_operand.vmem [shape: f32[96,128], index: 1, kind: input, shape index: {}]   ;;  %s1380_s2 = inlined_call_operand.vmem [shape: f32[1,128], index: 2, kind: input, shape index: {}]   ;;  %s1381_s3 = inlined_call_operand.vmem [shape: f32[208,128], index: 3, kind: output, shape index: {}]  }
   0x1   :  { %s1043_s14 = smov 0  }
   0x2 LB: > { %s25_s15 = sadd.s32 1, %s1008_s13  ;;  %p785_p0 = scmp.ge.s32.totalorder %s1012_s14, 1  ;;  %s1012_s14 = sphi %s1043_s14, %s13_s14   ;;  %s1008_s13 = sphi %s1041_s13, %s1383_s13   ;;  %s1004_s12 = sphi %s1039_s12, %s1382_s12  }
   0x3   : > { %p27_p1 = scmp.ge.s32.totalorder %s25_s15, 2  ;;  %p169_p2 = scmp.lt.s32.totalorder %s1012_s14, 3 }
   0x5   : > { %s1385_s15 = smov (%p27_p1, %s25_s15), 0  ;;  %p170_p3 = pnand %p785_p0, %p169_p2 }
   0x6   : > { %s203_s16 = smul.u32 (!%p170_p3), 13, %s1004_s12  ;;  %v475_v7 = vld [vmem:[%s1379_s1] sm:$0xff] (!%p170_p3)  ;;  %v476_v8 = vld [vmem:[%s1379_s1 + $0x8] sm:$0xff] (!%p170_p3)  ;;  %v1014_v12 = vmov (!%p170_p3), 0.0|0.0   ;;  %v477_v15 = vld [vmem:[%s1379_s1 + $0x10] sm:$0xff] (!%p170_p3)  ;;  %vm251_vm0 = vcmask (!%p170_p3), 261120  }
   0x7   : > { %173 = sbr.rel (%p170_p3) target bundleno = 422 (0x1a6), region = 32  ;;  %v906_v10 = vpack.c.bf16 (!%p170_p3), %v476_v8, %v475_v7  ;;  %905 = vmatprep.subr.bf16.mxu0 (!%p170_p3), %v1014_v12  ;;  %923 = vmatprep.subr.bf16.mxu1 (!%p170_p3), %v1014_v12  ;;  %v478_v16 = vld [vmem:[%s1379_s1 + $0x18] sm:$0xff] (!%p170_p3)  ;;  %v479_v23 = vld [vmem:[%s1379_s1 + $0x20] sm:$0xff] (!%p170_p3)  ;;  %v480_v24 = vld [vmem:[%s1379_s1 + $0x28] sm:$0xff] (!%p170_p3)  ;;  %s1015_s10 = smov (!%p170_p3), 32   ;;  %vm1016_vm1 = vmmov (!%p170_p3), 0  }
   0x8   : > { %p204_p4 = scmp.lt.s32.totalorder (!%p170_p3), %s203_s16, 25  ;;  %v909_v18 = vpack.c.bf16 (!%p170_p3), %v478_v16, %v477_v15  ;;  %v912_v27 = vpack.c.bf16 (!%p170_p3), %v480_v24, %v479_v23  ;;  %v481_v38 = vld [vmem:[%s1379_s1 + $0x30] sm:$0xff] (!%p170_p3)  ;;  %v482_v39 = vld [vmem:[%s1379_s1 + $0x38] sm:$0xff] (!%p170_p3)  ;;  %v483_v62 = vld [vmem:[%s1379_s1 + $0x40] sm:$0xff] (!%p170_p3)  ;;  %s1018_s24 = smov (!%p170_p3), 64   ;;  %vm356_vm2 = vcmask (!%p170_p3), 523520  }
   0x9   : > { %907 = vmatpush3.bf16.msra.mxu0 (!%p170_p3), %v906_v10  ;;  %929 = vmatpush3.bf16.msra.mxu1 (!%p170_p3), %v906_v10  ;;  %v915_v44 = vpack.c.bf16 (!%p170_p3), %v482_v39, %v481_v38  ;;  %v484_v63 = vld [vmem:[%s1379_s1 + $0x48] sm:$0xff] (!%p170_p3)  ;;  %vm448_vm3 = vcmask (!%p170_p3), 785920   ;;  %vm494_vm4 = vcmask (!%p170_p3), 785408  }
   0xa   : > { %908 = vmatprep.subr.bf16.mxu0 (!%p170_p3), %v1014_v12  ;;  %924 = vmatprep.subr.bf16.mxu1 (!%p170_p3), %v1014_v12 }
   0xd   : > { %910 = vmatpush3.bf16.msra.mxu0 (!%p170_p3), %v909_v18  ;;  %930 = vmatpush3.bf16.msra.mxu1 (!%p170_p3), %v909_v18 }
   0xe   : > { %s1387_s16 = smov (!%p204_p4, %s203_s16), 25  ;;  %911 = vmatprep.subr.bf16.mxu0 %v1014_v12  ;;  %925 = vmatprep.subr.bf16.mxu1 %v1014_v12 }
   0xf   : > { %s786_s17 = sshll.u32 %s1387_s16, 3 }
  0x10   : > { %s1065_s20 = scalar_lea.vmem %s1378_s0, %s786_s17  ;;  %s1354_s29 = scalar_lea.vmem %s1381_s3, %s786_s17 }
  0x11   : > { %v226_v0 = vld [vmem:[%s1065_s20 + $0x8] sm:$0xff]  ;;  %v225_v1 = vld [vmem:[%s1065_s20] sm:$0xff]  ;;  %v232_v2 = vld [vmem:[%s1065_s20 + $0x38] sm:$0xff]  ;;  %913 = vmatpush3.bf16.msra.mxu0 %v912_v27  ;;  %931 = vmatpush3.bf16.msra.mxu1 %v912_v27 }
  0x12   : > { %964 = vtanh.f32 %v226_v0  ;;  %v227_v3 = vld [vmem:[%s1065_s20 + $0x10] sm:$0xff]  ;;  %v233_v4 = vld [vmem:[%s1065_s20 + $0x40] sm:$0xff]  ;;  %v228_v5 = vld [vmem:[%s1065_s20 + $0x18] sm:$0xff]  ;;  %914 = vmatprep.subr.bf16.mxu0 %v1014_v12  ;;  %926 = vmatprep.subr.bf16.mxu1 %v1014_v12 }
  0x13   : > { %966 = vtanh.f32 %v225_v1  ;;  %v234_v6 = vld [vmem:[%s1065_s20 + $0x48] sm:$0xff]  ;;  %v229_v9 = vld [vmem:[%s1065_s20 + $0x20] sm:$0xff]  ;;  %v235_v11 = vld [vmem:[%s1065_s20 + $0x50] sm:$0xff] }
  0x14   : > { %968 = vtanh.f32 %v232_v2  ;;  %v236_v13 = vld [vmem:[%s1065_s20 + $0x58] sm:$0xff]  ;;  %v230_v14 = vld [vmem:[%s1065_s20 + $0x28] sm:$0xff]  ;;  %v237_v17 = vld [vmem:[%s1065_s20 + $0x60] sm:$0xff] }
  0x15   : > { %970 = vtanh.f32 %v227_v3  ;;  %v231_v19 = vld [vmem:[%s1065_s20 + $0x30] sm:$0xff]  ;;  %916 = vmatpush3.bf16.msra.mxu0 %v915_v44  ;;  %932 = vmatpush3.bf16.msra.mxu1 %v915_v44 }
  0x16   : > { %972 = vtanh.f32 %v233_v4  ;;  %917 = vmatprep.subr.bf16.mxu0 %v1014_v12  ;;  %927 = vmatprep.subr.bf16.mxu1 %v1014_v12  ;;  %v485_v4 = vld [vmem:[%s1379_s1 + $0x50] sm:$0xff] }
  0x17   : > { %974 = vtanh.f32 %v228_v5  ;;  %v486_v5 = vld [vmem:[%s1379_s1 + $0x58] sm:$0xff] }
  0x18   : > { %976 = vtanh.f32 %v234_v6  ;;  %v918_v6 = vpack.c.bf16 %v484_v63, %v483_v62 }
  0x19   : > { %978 = vtanh.f32 %v229_v9  ;;  %v921_v9 = vpack.c.bf16 %v486_v5, %v485_v4 }
  0x1a   : > { %980 = vtanh.f32 %v235_v11  ;;  %919 = vmatpush3.bf16.msra.mxu0 %v918_v6  ;;  %933 = vmatpush3.bf16.msra.mxu1 %v918_v6 }
  0x1b   : > { %982 = vtanh.f32 %v236_v13  ;;  %920 = vmatprep.subr.bf16.mxu0 %v1014_v12  ;;  %v1017_v13 = vmov 0.0   ;;  %928 = vmatprep.subr.bf16.mxu1 %v1014_v12 }
  0x1c   : > { %v1096_v20 = vpop.eup %964  ;;  %984 = vtanh.f32 %v230_v14  ;;  %866 = vmatprep.mubr.msk.f32.mxu0 %vm1016_vm1, %v1017_v13  ;;  %887 = vmatprep.mubr.msk.f32.mxu1 %vm1016_vm1, %v1017_v13 }
  0x1d   : > { %v1098_v21 = vpop.eup %966  ;;  %v1101_v22 = vmul.f32 2.0, %v1096_v20  ;;  %986 = vtanh.f32 %v237_v17  ;;  %253 = vst.msk [vmem:[#allocation2 + $0x8] sm:$0xff] %vm251_vm0, %v1096_v20 }
  0x1e   : > { %v1113_v25 = vpop.eup %968  ;;  %v1116_v26 = vmul.f32 2.0, %v1098_v21  ;;  %988 = vtanh.f32 %v231_v19  ;;  %252 = vst.msk [vmem:[#allocation2] sm:$0xff] %vm251_vm0, %v1098_v21  ;;  %922 = vmatpush3.bf16.msra.mxu0 %v921_v9  ;;  %934 = vmatpush3.bf16.msra.mxu1 %v921_v9 }
  0x1f   : > { %v1120_v28 = vpop.eup %970  ;;  %v279_v29 = vmul.f32 %v1096_v20, %v1101_v22  ;;  %v1125_v30 = vmul.f32 2.0, %v1113_v25  ;;  %259 = vst.msk [vmem:[#allocation2 + $0x38] sm:$0xff] %vm251_vm0, %v1113_v25 }
  0x20   : > { %v1129_v31 = vpop.eup %972  ;;  %v278_v32 = vmul.f32 %v1098_v21, %v1116_v26  ;;  %v1134_v33 = vmul.f32 2.0, %v1120_v28  ;;  %254 = vst.msk [vmem:[#allocation2 + $0x10] sm:$0xff] %vm251_vm0, %v1120_v28 }
  0x21   : > { %v1138_v34 = vpop.eup %974  ;;  %v1140_v35 = vadd.f32 -1.0, %v279_v29  ;;  %v285_v36 = vmul.f32 %v1113_v25, %v1125_v30  ;;  %v1145_v37 = vmul.f32 2.0, %v1129_v31  ;;  %260 = vst.msk [vmem:[#allocation2 + $0x40] sm:$0xff] %vm251_vm0, %v1129_v31 }
  0x22   : > { %v1157_v40 = vpop.eup %976  ;;  %v788_v41 = vadd.f32 -1.0, %v278_v32  ;;  %v280_v42 = vmul.f32 %v1120_v28, %v1134_v33  ;;  %v1162_v43 = vmul.f32 2.0, %v1138_v34  ;;  %255 = vst.msk [vmem:[#allocation2 + $0x18] sm:$0xff] %vm251_vm0, %v1138_v34 }
  0x23   : > { %v1166_v45 = vpop.eup %978  ;;  %319 = vrot.lane.b32.xlu1 %v1140_v35, %s1015_s10  ;;  %v795_v46 = vadd.f32 -1.0, %v285_v36  ;;  %v286_v47 = vmul.f32 %v1129_v31, %v1145_v37  ;;  %v1173_v48 = vmul.f32 2.0, %v1157_v40  ;;  %261 = vst.msk [vmem:[#allocation2 + $0x48] sm:$0xff] %vm251_vm0, %v1157_v40  ;;  %v371_v10 = vmul.f32 %v1140_v35, %v1101_v22 }
  0x24   : > { %v1177_v49 = vpop.eup %980  ;;  %317 = vrot.lane.b32.xlu0 %v788_v41, %s1015_s10  ;;  %v790_v50 = vadd.f32 -1.0, %v280_v42  ;;  %v281_v51 = vmul.f32 %v1138_v34, %v1162_v43  ;;  %v1183_v52 = vmul.f32 2.0, %v1166_v45  ;;  %256 = vst.msk [vmem:[#allocation2 + $0x20] sm:$0xff] %vm251_vm0, %v1166_v45  ;;  %v370_v2 = vmul.f32 %v788_v41, %v1116_v26 }
  0x25   : > { %v1187_v53 = vpop.eup %982  ;;  %262 = vst.msk [vmem:[#allocation2 + $0x50] sm:$0xff] %vm251_vm0, %v1177_v49  ;;  %v796_v56 = vadd.f32 -1.0, %v286_v47  ;;  %v287_v57 = vmul.f32 %v1157_v40, %v1173_v48  ;;  %v275_v58 = vmul.f32 2.0, %v1177_v49  ;;  %v377_v8 = vmul.f32 %v795_v46, %v1125_v30 }
  0x26   : > { %v1192_v54 = vpop.eup %984  ;;  %263 = vst.msk [vmem:[#allocation2 + $0x58] sm:$0xff] %vm251_vm0, %v1187_v53  ;;  %v791_v60 = vadd.f32 -1.0, %v281_v51  ;;  %v282_v61 = vmul.f32 %v1166_v45, %v1183_v52  ;;  %v383_v11 = vsub.f32 %v370_v2, %v1098_v21  ;;  %v384_v16 = vsub.f32 %v371_v10, %v1096_v20 }
  0x27   : > { %v1197_v55 = vpop.eup %986  ;;  %331 = vrot.lane.b32.xlu1 %v795_v46, %s1015_s10  ;;  %257 = vst.msk [vmem:[#allocation2 + $0x28] sm:$0xff] %vm251_vm0, %v1192_v54  ;;  %v797_v0 = vadd.f32 -1.0, %v287_v57  ;;  %v288_v1 = vmul.f32 %v1177_v49, %v275_v58  ;;  %v390_v14 = vsub.f32 %v377_v8, %v1113_v25  ;;  %v378_v15 = vmul.f32 %v796_v56, %v1145_v37 }
  0x28   : > { %v1205_v59 = vpop.eup %988  ;;  %321 = vrot.lane.b32.xlu0 %v790_v50, %s1015_s10  ;;  %264 = vst.msk [vmem:[#allocation2 + $0x60] sm:$0xff] %vm251_vm0, %v1197_v55  ;;  %v792_v3 = vadd.f32 -1.0, %v282_v61  ;;  %v372_v17 = vmul.f32 %v790_v50, %v1134_v33  ;;  %v276_v19 = vmul.f32 2.0, %v1187_v53  ;;  %v373_v22 = vmul.f32 %v791_v60, %v1162_v43 }
  0x29   : > { %258 = vst.msk [vmem:[#allocation2 + $0x30] sm:$0xff] %vm251_vm0, %v1205_v59  ;;  %v798_v7 = vadd.f32 -1.0, %v288_v1  ;;  %v391_v12 = vsub.f32 %v378_v15, %v1129_v31  ;;  %v379_v18 = vmul.f32 %v797_v0, %v1173_v48  ;;  %v270_v23 = vmul.f32 2.0, %v1192_v54 }
  0x2a   : > { %v385_v21 = vsub.f32 %v372_v17, %v1120_v28  ;;  %v289_v25 = vmul.f32 %v1187_v53, %v276_v19  ;;  %v386_v26 = vsub.f32 %v373_v22, %v1138_v34  ;;  %v374_v27 = vmul.f32 %v792_v3, %v1183_v52 }
  0x2b   : > { %333 = vrot.lane.b32.xlu1 %v796_v56, %s1015_s10  ;;  %v392_v20 = vsub.f32 %v379_v18, %v1157_v40  ;;  %v380_v24 = vmul.f32 %v798_v7, %v275_v58  ;;  %v283_v29 = vmul.f32 %v1192_v54, %v270_v23  ;;  %v277_v31 = vmul.f32 2.0, %v1197_v55 }
  0x2c   : > { %323 = vrot.lane.b32.xlu0 %v791_v60, %s1015_s10  ;;  %v799_v30 = vadd.f32 -1.0, %v289_v25  ;;  %v387_v32 = vsub.f32 %v374_v27, %v1166_v45  ;;  %v271_v35 = vmul.f32 2.0, %v1205_v59 }
  0x2d   : > { %v393_v28 = vsub.f32 %v380_v24, %v1177_v49  ;;  %v793_v33 = vadd.f32 -1.0, %v283_v29  ;;  %v290_v36 = vmul.f32 %v1197_v55, %v277_v31 }
  0x2e   : > { %v381_v34 = vmul.f32 %v799_v30, %v276_v19  ;;  %v284_v38 = vmul.f32 %v1205_v59, %v271_v35 }
  0x2f   : > { %335 = vrot.lane.b32.xlu1 %v797_v0, %s1015_s10  ;;  %v375_v37 = vmul.f32 %v793_v33, %v270_v23  ;;  %v800_v40 = vadd.f32 -1.0, %v290_v36 }
  0x30   : > { %325 = vrot.lane.b32.xlu0 %v792_v3, %s1015_s10  ;;  %v394_v39 = vsub.f32 %v381_v34, %v1187_v53  ;;  %v794_v42 = vadd.f32 -1.0, %v284_v38 }
  0x31   : > { %v388_v41 = vsub.f32 %v375_v37, %v1192_v54  ;;  %v382_v43 = vmul.f32 %v800_v40, %v277_v31 }
  0x32   : > { %v376_v44 = vmul.f32 %v794_v42, %v271_v35 }
  0x33   : > { %337 = vrot.lane.b32.xlu1 %v798_v7, %s1015_s10  ;;  %v395_v45 = vsub.f32 %v382_v43, %v1197_v55 }
  0x34   : > { %409 = vrot.lane.b32.xlu0 %v383_v11, %s1018_s24  ;;  %v389_v46 = vsub.f32 %v376_v44, %v1205_v59 }
  0x37   : > { %423 = vrot.lane.b32.xlu1 %v390_v14, %s1018_s24 }
  0x38   : > { %411 = vrot.lane.b32.xlu0 %v384_v16, %s1018_s24 }
  0x3b   : > { %425 = vrot.lane.b32.xlu1 %v391_v12, %s1018_s24 }
  0x3c   : > { %413 = vrot.lane.b32.xlu0 %v385_v21, %s1018_s24 }
  0x3f   : > { %427 = vrot.lane.b32.xlu1 %v392_v20, %s1018_s24  ;;  %v801_v20 = vld [vmem:[%s1380_s2] ss:$0 sm:$0xff] }
  0x40   : > { %415 = vrot.lane.b32.xlu0 %v386_v26, %s1018_s24 }
  0x43   : > { %429 = vrot.lane.b32.xlu1 %v393_v28, %s1018_s24 }
  0x44   : > { %417 = vrot.lane.b32.xlu0 %v387_v32, %s1018_s24 }
  0x47   : > { %339 = vrot.lane.b32.xlu1 %v799_v30, %s1015_s10 }
  0x48   : > { %327 = vrot.lane.b32.xlu0 %v793_v33, %s1015_s10 }
  0x4b   : > { %431 = vrot.lane.b32.xlu1 %v394_v39, %s1018_s24 }
  0x4c   : > { %419 = vrot.lane.b32.xlu0 %v388_v41, %s1018_s24 }
  0x4f   : > { %341 = vrot.lane.b32.xlu1 %v800_v40, %s1015_s10 }
  0x50   : > { %329 = vrot.lane.b32.xlu0 %v794_v42, %s1015_s10 }
  0x53   : > { %433 = vrot.lane.b32.xlu1 %v395_v45, %s1018_s24 }
  0x54   : > { %421 = vrot.lane.b32.xlu0 %v389_v46, %s1018_s24 }
  0x95   : > { %v320_v47 = vpop.permute.xlu1 %319 }
  0x96   : > { %358 = vst.msk [vmem:[#allocation2 + $0x8] sm:$0xff] %vm356_vm2, %v320_v47  ;;  %v318_v48 = vpop.permute.xlu0 %317 }
  0x97   : > { %357 = vst.msk [vmem:[#allocation2] sm:$0xff] %vm356_vm2, %v318_v48 }
  0x99   : > { %v332_v49 = vpop.permute.xlu1 %331 }
  0x9a   : > { %364 = vst.msk [vmem:[#allocation2 + $0x38] sm:$0xff] %vm356_vm2, %v332_v49  ;;  %v322_v50 = vpop.permute.xlu0 %321 }
  0x9b   : > { %359 = vst.msk [vmem:[#allocation2 + $0x10] sm:$0xff] %vm356_vm2, %v322_v50 }
  0x9d   : > { %v334_v51 = vpop.permute.xlu1 %333 }
  0x9e   : > { %365 = vst.msk [vmem:[#allocation2 + $0x40] sm:$0xff] %vm356_vm2, %v334_v51  ;;  %v324_v52 = vpop.permute.xlu0 %323 }
  0x9f   : > { %360 = vst.msk [vmem:[#allocation2 + $0x18] sm:$0xff] %vm356_vm2, %v324_v52 }
  0xa1   : > { %v336_v53 = vpop.permute.xlu1 %335 }
  0xa2   : > { %366 = vst.msk [vmem:[#allocation2 + $0x48] sm:$0xff] %vm356_vm2, %v336_v53  ;;  %v326_v54 = vpop.permute.xlu0 %325 }
  0xa3   : > { %361 = vst.msk [vmem:[#allocation2 + $0x20] sm:$0xff] %vm356_vm2, %v326_v54 }
  0xa5   : > { %v338_v55 = vpop.permute.xlu1 %337 }
  0xa6   : > { %367 = vst.msk [vmem:[#allocation2 + $0x50] sm:$0xff] %vm356_vm2, %v338_v55  ;;  %v410_v56 = vpop.permute.xlu0 %409 }
  0xa7   : > { %449 = vst.msk [vmem:[#allocation2] sm:$0xff] %vm448_vm3, %v410_v56 }
  0xa9   : > { %v424_v57 = vpop.permute.xlu1 %423 }
  0xaa   : > { %456 = vst.msk [vmem:[#allocation2 + $0x38] sm:$0xff] %vm448_vm3, %v424_v57  ;;  %v412_v58 = vpop.permute.xlu0 %411 }
  0xab   : > { %450 = vst.msk [vmem:[#allocation2 + $0x8] sm:$0xff] %vm448_vm3, %v412_v58 }
  0xad   : > { %v426_v59 = vpop.permute.xlu1 %425 }
  0xae   : > { %457 = vst.msk [vmem:[#allocation2 + $0x40] sm:$0xff] %vm448_vm3, %v426_v59  ;;  %v414_v60 = vpop.permute.xlu0 %413  ;;  %v462_v61 = vld [vmem:[#allocation2] sm:$0xff] }
  0xaf   : > { %451 = vst.msk [vmem:[#allocation2 + $0x10] sm:$0xff] %vm448_vm3, %v414_v60  ;;  %867 = vmatmul.mubr.msk.f32.vlgmr.msra.gmra.mrb[0].mxu0 %vm494_vm4, %v462_v61 }
  0xb0   : > { %869 = vmatprep.mubr.msk.f32.mxu0 %vm1016_vm1, %v1017_v13 }
  0xb1   : > { %v428_v62 = vpop.permute.xlu1 %427  ;;  %v469_v63 = vld [vmem:[#allocation2 + $0x38] sm:$0xff] }
  0xb2   : > { %458 = vst.msk [vmem:[#allocation2 + $0x48] sm:$0xff] %vm448_vm3, %v428_v62  ;;  %v416_v0 = vpop.permute.xlu0 %415  ;;  %v463_v1 = vld [vmem:[#allocation2 + $0x8] sm:$0xff]  ;;  %888 = vmatmul.mubr.msk.f32.vlgmr.msra.gmra.mrb[0].mxu1 %vm494_vm4, %v469_v63 }
  0xb3   : > { %452 = vst.msk [vmem:[#allocation2 + $0x18] sm:$0xff] %vm448_vm3, %v416_v0  ;;  %870 = vmatmul.mubr.msk.f32.gmra.mrb[2].mxu0 %vm494_vm4, %v463_v1  ;;  %890 = vmatprep.mubr.msk.f32.mxu1 %vm1016_vm1, %v1017_v13 }
  0xb4   : > { %872 = vmatprep.mubr.msk.f32.mxu0 %vm1016_vm1, %v1017_v13 }
  0xb5   : > { %v430_v2 = vpop.permute.xlu1 %429  ;;  %v470_v3 = vld [vmem:[#allocation2 + $0x40] sm:$0xff] }
  0xb6   : > { %459 = vst.msk [vmem:[#allocation2 + $0x50] sm:$0xff] %vm448_vm3, %v430_v2  ;;  %v418_v4 = vpop.permute.xlu0 %417  ;;  %v464_v5 = vld [vmem:[#allocation2 + $0x10] sm:$0xff]  ;;  %891 = vmatmul.mubr.msk.f32.gmra.mrb[2].mxu1 %vm494_vm4, %v470_v3 }
  0xb7   : > { %453 = vst.msk [vmem:[#allocation2 + $0x20] sm:$0xff] %vm448_vm3, %v418_v4  ;;  %873 = vmatmul.mubr.msk.f32.gmra.mrb[4].mxu0 %vm494_vm4, %v464_v5  ;;  %893 = vmatprep.mubr.msk.f32.mxu1 %vm1016_vm1, %v1017_v13 }
  0xb8   : > { %875 = vmatprep.mubr.msk.f32.mxu0 %vm1016_vm1, %v1017_v13 }
  0xb9   : > { %v340_v6 = vpop.permute.xlu1 %339  ;;  %v471_v7 = vld [vmem:[#allocation2 + $0x48] sm:$0xff] }
  0xba   : > { %368 = vst.msk [vmem:[#allocation2 + $0x58] sm:$0xff] %vm356_vm2, %v340_v6  ;;  %v328_v8 = vpop.permute.xlu0 %327  ;;  %v465_v9 = vld [vmem:[#allocation2 + $0x18] sm:$0xff]  ;;  %894 = vmatmul.mubr.msk.f32.gmra.mrb[4].mxu1 %vm494_vm4, %v471_v7 }
  0xbb   : > { %362 = vst.msk [vmem:[#allocation2 + $0x28] sm:$0xff] %vm356_vm2, %v328_v8  ;;  %876 = vmatmul.mubr.msk.f32.gmra.mrb[6].mxu0 %vm494_vm4, %v465_v9  ;;  %896 = vmatprep.mubr.msk.f32.mxu1 %vm1016_vm1, %v1017_v13 }
  0xbc   : > { %878 = vmatprep.mubr.msk.f32.mxu0 %vm1016_vm1, %v1017_v13 }
  0xbd   : > { %v432_v10 = vpop.permute.xlu1 %431  ;;  %v472_v11 = vld [vmem:[#allocation2 + $0x50] sm:$0xff] }
  0xbe   : > { %460 = vst.msk [vmem:[#allocation2 + $0x58] sm:$0xff] %vm448_vm3, %v432_v10  ;;  %v420_v14 = vpop.permute.xlu0 %419  ;;  %v466_v15 = vld [vmem:[#allocation2 + $0x20] sm:$0xff]  ;;  %897 = vmatmul.mubr.msk.f32.gmra.mrb[6].mxu1 %vm494_vm4, %v472_v11 }
  0xbf   : > { %454 = vst.msk [vmem:[#allocation2 + $0x28] sm:$0xff] %vm448_vm3, %v420_v14  ;;  %879 = vmatmul.mubr.msk.f32.gmra.mrb[8].mxu0 %vm494_vm4, %v466_v15  ;;  %899 = vmatprep.mubr.msk.f32.mxu1 %vm1016_vm1, %v1017_v13 }
  0xc0   : > { %881 = vmatprep.mubr.msk.f32.mxu0 %vm1016_vm1, %v1017_v13 }
  0xc1   : > { %v342_v16 = vpop.permute.xlu1 %341 }
  0xc2   : > { %369 = vst.msk [vmem:[#allocation2 + $0x60] sm:$0xff] %vm356_vm2, %v342_v16  ;;  %v330_v17 = vpop.permute.xlu0 %329 }
  0xc3   : > { %363 = vst.msk [vmem:[#allocation2 + $0x30] sm:$0xff] %vm356_vm2, %v330_v17 }
  0xc5   : > { %v434_v12 = vpop.permute.xlu1 %433  ;;  %v473_v18 = vld [vmem:[#allocation2 + $0x58] sm:$0xff] }
  0xc6   : > { %461 = vst.msk [vmem:[#allocation2 + $0x60] sm:$0xff] %vm448_vm3, %v434_v12  ;;  %v422_v19 = vpop.permute.xlu0 %421  ;;  %v467_v21 = vld [vmem:[#allocation2 + $0x28] sm:$0xff]  ;;  %900 = vmatmul.mubr.msk.f32.gmra.mrb[8].mxu1 %vm494_vm4, %v473_v18 }
  0xc7   : > { %455 = vst.msk [vmem:[#allocation2 + $0x30] sm:$0xff] %vm448_vm3, %v422_v19  ;;  %882 = vmatmul.mubr.msk.f32.gmra.mrb[10].mxu0 %vm494_vm4, %v467_v21  ;;  %902 = vmatprep.mubr.msk.f32.mxu1 %vm1016_vm1, %v1017_v13 }
  0xc8   : > { %884 = vmatprep.mubr.msk.f32.mxu0 %vm1016_vm1, %v1017_v13 }
  0xcd   : > { %v474_v22 = vld [vmem:[#allocation2 + $0x60] sm:$0xff] }
  0xce   : > { %v468_v23 = vld [vmem:[#allocation2 + $0x30] sm:$0xff]  ;;  %903 = vmatmul.mubr.msk.f32.gmra.mrb[10].mxu1 %vm494_vm4, %v474_v22 }
  0xcf   : > { %885 = vmatmul.mubr.msk.f32.gmra.mrb[12].mxu0 %vm494_vm4, %v468_v23 }
 0x182   : > { %v600_v13 = vpop.f32.mrb[0].mxu0 }
 0x183   : > { %v601_v24 = vadd.f32 %v801_v20, %v600_v13  ;;  %v868_v25 = vpop.f32.mrb[1].mxu0 }
 0x185   : > { %664 = vst [vmem:[%s1354_s29] sm:$0xff] %v601_v24  ;;  %v635_v26 = vpop.f32.mrb[0].mxu1 }
 0x186   : > { %v605_v27 = vpop.f32.mrb[2].mxu0  ;;  %v636_v29 = vadd.f32 %v801_v20, %v635_v26  ;;  %v889_v28 = vpop.f32.mrb[1].mxu1 }
 0x187   : > { %v606_v30 = vadd.f32 %v801_v20, %v605_v27  ;;  %v871_v31 = vpop.f32.mrb[3].mxu0 }
 0x188   : > { %671 = vst [vmem:[%s1354_s29 + $0x38] sm:$0xff] %v636_v29 }
 0x189   : > { %665 = vst [vmem:[%s1354_s29 + $0x8] sm:$0xff] %v606_v30  ;;  %v640_v32 = vpop.f32.mrb[2].mxu1 }
 0x18a   : > { %v610_v33 = vpop.f32.mrb[4].mxu0  ;;  %v641_v35 = vadd.f32 %v801_v20, %v640_v32  ;;  %v892_v34 = vpop.f32.mrb[3].mxu1 }
 0x18b   : > { %v611_v36 = vadd.f32 %v801_v20, %v610_v33  ;;  %v874_v37 = vpop.f32.mrb[5].mxu0 }
 0x18c   : > { %672 = vst [vmem:[%s1354_s29 + $0x40] sm:$0xff] %v641_v35 }
 0x18d   : > { %666 = vst [vmem:[%s1354_s29 + $0x10] sm:$0xff] %v611_v36  ;;  %v645_v38 = vpop.f32.mrb[4].mxu1 }
 0x18e   : > { %v615_v39 = vpop.f32.mrb[6].mxu0  ;;  %v646_v40 = vadd.f32 %v801_v20, %v645_v38  ;;  %v895_v41 = vpop.f32.mrb[5].mxu1 }
 0x18f   : > { %v616_v42 = vadd.f32 %v801_v20, %v615_v39  ;;  %v877_v43 = vpop.f32.mrb[7].mxu0 }
 0x190   : > { %673 = vst [vmem:[%s1354_s29 + $0x48] sm:$0xff] %v646_v40 }
 0x191   : > { %667 = vst [vmem:[%s1354_s29 + $0x18] sm:$0xff] %v616_v42  ;;  %v650_v44 = vpop.f32.mrb[6].mxu1 }
 0x192   : > { %v620_v45 = vpop.f32.mrb[8].mxu0  ;;  %v651_v46 = vadd.f32 %v801_v20, %v650_v44  ;;  %v898_v47 = vpop.f32.mrb[7].mxu1 }
 0x193   : > { %v621_v48 = vadd.f32 %v801_v20, %v620_v45  ;;  %v880_v49 = vpop.f32.mrb[9].mxu0 }
 0x194   : > { %674 = vst [vmem:[%s1354_s29 + $0x50] sm:$0xff] %v651_v46 }
 0x195   : > { %668 = vst [vmem:[%s1354_s29 + $0x20] sm:$0xff] %v621_v48 }
 0x199   : > { %v655_v50 = vpop.f32.mrb[8].mxu1 }
 0x19a   : > { %v625_v51 = vpop.f32.mrb[10].mxu0  ;;  %v656_v52 = vadd.f32 %v801_v20, %v655_v50  ;;  %v901_v53 = vpop.f32.mrb[9].mxu1 }
 0x19b   : > { %v626_v54 = vadd.f32 %v801_v20, %v625_v51  ;;  %v883_v55 = vpop.f32.mrb[11].mxu0 }
 0x19c   : > { %675 = vst [vmem:[%s1354_s29 + $0x58] sm:$0xff] %v656_v52 }
 0x19d   : > { %669 = vst [vmem:[%s1354_s29 + $0x28] sm:$0xff] %v626_v54 }
 0x1a1   : > { %v660_v56 = vpop.f32.mrb[10].mxu1 }
 0x1a2   : > { %v630_v57 = vpop.f32.mrb[12].mxu0  ;;  %v661_v58 = vadd.f32 %v801_v20, %v660_v56  ;;  %v904_v59 = vpop.f32.mrb[11].mxu1 }
 0x1a3   : > { %v631_v60 = vadd.f32 %v801_v20, %v630_v57  ;;  %v886_v61 = vpop.f32.mrb[13].mxu0 }
 0x1a4   : > { %676 = vst [vmem:[%s1354_s29 + $0x60] sm:$0xff] %v661_v58 }
 0x1a5   : > { %670 = vst [vmem:[%s1354_s29 + $0x30] sm:$0xff] %v631_v60 }
 0x1a6 PF: > { %s13_s14 = sadd.s32 1, %s1012_s14   ;;  %s1382_s12 = smov %s1008_s13 }
 0x1a7   : > { %p10_p5 = scmp.ge.s32.totalorder %s13_s14, 4   ;;  %s1383_s13 = smov %s1385_s15 }
 0x1a9   :  { %12 = sbr.rel (!%p10_p5) target bundleno = 2 (0x2), region = 68 }

// kernel: chebykan_forward.1
= control target key start
LH: loop header
LB: loop body
LE: loop exit
PB: predicated region body
PF: predicated region fallthrough
CT: control target
= control target key end

     0   :  { %s1039_s12 = smov 0   ;;  %s1041_s13 = smov 0   ;;  %s1378_s0 = inlined_call_operand.vmem [shape: f32[208,32], index: 0, kind: input, shape index: {}]   ;;  %s1379_s1 = inlined_call_operand.vmem [shape: f32[96,128], index: 1, kind: input, shape index: {}]   ;;  %s1380_s2 = inlined_call_operand.vmem [shape: f32[1,128], index: 2, kind: input, shape index: {}]   ;;  %s1381_s3 = inlined_call_operand.vmem [shape: f32[208,128], index: 3, kind: output, shape index: {}]  }
   0x1   :  { %s1043_s14 = smov 0  }
   0x2 LB: > { %s25_s15 = sadd.s32 1, %s1008_s13  ;;  %p785_p0 = scmp.ge.s32.totalorder %s1012_s14, 1  ;;  %s1012_s14 = sphi %s1043_s14, %s13_s14   ;;  %s1008_s13 = sphi %s1041_s13, %s1383_s13   ;;  %s1004_s12 = sphi %s1039_s12, %s1382_s12  }
   0x3   : > { %p27_p1 = scmp.ge.s32.totalorder %s25_s15, 2  ;;  %p169_p2 = scmp.lt.s32.totalorder %s1012_s14, 3 }
   0x5   : > { %s1385_s15 = smov (%p27_p1, %s25_s15), 0  ;;  %p170_p3 = pnand %p785_p0, %p169_p2 }
   0x6   : > { %s203_s16 = smul.u32 (!%p170_p3), 13, %s1004_s12  ;;  %v475_v7 = vld [vmem:[%s1379_s1] sm:$0xff] (!%p170_p3)  ;;  %v476_v8 = vld [vmem:[%s1379_s1 + $0x8] sm:$0xff] (!%p170_p3)  ;;  %v1014_v12 = vmov (!%p170_p3), 0.0|0.0   ;;  %v477_v15 = vld [vmem:[%s1379_s1 + $0x10] sm:$0xff] (!%p170_p3)  ;;  %vm251_vm0 = vcmask (!%p170_p3), 261120  }
   0x7   : > { %173 = sbr.rel (%p170_p3) target bundleno = 422 (0x1a6), region = 32  ;;  %v906_v10 = vpack.c.bf16 (!%p170_p3), %v476_v8, %v475_v7  ;;  %905 = vmatprep.subr.bf16.mxu0 (!%p170_p3), %v1014_v12  ;;  %923 = vmatprep.subr.bf16.mxu1 (!%p170_p3), %v1014_v12  ;;  %v478_v16 = vld [vmem:[%s1379_s1 + $0x18] sm:$0xff] (!%p170_p3)  ;;  %v479_v23 = vld [vmem:[%s1379_s1 + $0x20] sm:$0xff] (!%p170_p3)  ;;  %v480_v24 = vld [vmem:[%s1379_s1 + $0x28] sm:$0xff] (!%p170_p3)  ;;  %s1015_s10 = smov (!%p170_p3), 32   ;;  %vm1016_vm1 = vmmov (!%p170_p3), 0  }
   0x8   : > { %p204_p4 = scmp.lt.s32.totalorder (!%p170_p3), %s203_s16, 25  ;;  %v909_v18 = vpack.c.bf16 (!%p170_p3), %v478_v16, %v477_v15  ;;  %v912_v27 = vpack.c.bf16 (!%p170_p3), %v480_v24, %v479_v23  ;;  %v481_v38 = vld [vmem:[%s1379_s1 + $0x30] sm:$0xff] (!%p170_p3)  ;;  %v482_v39 = vld [vmem:[%s1379_s1 + $0x38] sm:$0xff] (!%p170_p3)  ;;  %v483_v62 = vld [vmem:[%s1379_s1 + $0x40] sm:$0xff] (!%p170_p3)  ;;  %s1018_s24 = smov (!%p170_p3), 64   ;;  %vm356_vm2 = vcmask (!%p170_p3), 523520  }
   0x9   : > { %907 = vmatpush3.bf16.msra.mxu0 (!%p170_p3), %v906_v10  ;;  %929 = vmatpush3.bf16.msra.mxu1 (!%p170_p3), %v906_v10  ;;  %v915_v44 = vpack.c.bf16 (!%p170_p3), %v482_v39, %v481_v38  ;;  %v484_v63 = vld [vmem:[%s1379_s1 + $0x48] sm:$0xff] (!%p170_p3)  ;;  %vm448_vm3 = vcmask (!%p170_p3), 785920   ;;  %vm494_vm4 = vcmask (!%p170_p3), 785408  }
   0xa   : > { %908 = vmatprep.subr.bf16.mxu0 (!%p170_p3), %v1014_v12  ;;  %924 = vmatprep.subr.bf16.mxu1 (!%p170_p3), %v1014_v12 }
   0xd   : > { %910 = vmatpush3.bf16.msra.mxu0 (!%p170_p3), %v909_v18  ;;  %930 = vmatpush3.bf16.msra.mxu1 (!%p170_p3), %v909_v18 }
   0xe   : > { %s1387_s16 = smov (!%p204_p4, %s203_s16), 25  ;;  %911 = vmatprep.subr.bf16.mxu0 %v1014_v12  ;;  %925 = vmatprep.subr.bf16.mxu1 %v1014_v12 }
   0xf   : > { %s786_s17 = sshll.u32 %s1387_s16, 3 }
  0x10   : > { %s1065_s20 = scalar_lea.vmem %s1378_s0, %s786_s17  ;;  %s1354_s29 = scalar_lea.vmem %s1381_s3, %s786_s17 }
  0x11   : > { %v226_v0 = vld [vmem:[%s1065_s20 + $0x8] sm:$0xff]  ;;  %v225_v1 = vld [vmem:[%s1065_s20] sm:$0xff]  ;;  %v232_v2 = vld [vmem:[%s1065_s20 + $0x38] sm:$0xff]  ;;  %913 = vmatpush3.bf16.msra.mxu0 %v912_v27  ;;  %931 = vmatpush3.bf16.msra.mxu1 %v912_v27 }
  0x12   : > { %964 = vtanh.f32 %v226_v0  ;;  %v227_v3 = vld [vmem:[%s1065_s20 + $0x10] sm:$0xff]  ;;  %v233_v4 = vld [vmem:[%s1065_s20 + $0x40] sm:$0xff]  ;;  %v228_v5 = vld [vmem:[%s1065_s20 + $0x18] sm:$0xff]  ;;  %914 = vmatprep.subr.bf16.mxu0 %v1014_v12  ;;  %926 = vmatprep.subr.bf16.mxu1 %v1014_v12 }
  0x13   : > { %966 = vtanh.f32 %v225_v1  ;;  %v234_v6 = vld [vmem:[%s1065_s20 + $0x48] sm:$0xff]  ;;  %v229_v9 = vld [vmem:[%s1065_s20 + $0x20] sm:$0xff]  ;;  %v235_v11 = vld [vmem:[%s1065_s20 + $0x50] sm:$0xff] }
  0x14   : > { %968 = vtanh.f32 %v232_v2  ;;  %v236_v13 = vld [vmem:[%s1065_s20 + $0x58] sm:$0xff]  ;;  %v230_v14 = vld [vmem:[%s1065_s20 + $0x28] sm:$0xff]  ;;  %v237_v17 = vld [vmem:[%s1065_s20 + $0x60] sm:$0xff] }
  0x15   : > { %970 = vtanh.f32 %v227_v3  ;;  %v231_v19 = vld [vmem:[%s1065_s20 + $0x30] sm:$0xff]  ;;  %916 = vmatpush3.bf16.msra.mxu0 %v915_v44  ;;  %932 = vmatpush3.bf16.msra.mxu1 %v915_v44 }
  0x16   : > { %972 = vtanh.f32 %v233_v4  ;;  %917 = vmatprep.subr.bf16.mxu0 %v1014_v12  ;;  %927 = vmatprep.subr.bf16.mxu1 %v1014_v12  ;;  %v485_v4 = vld [vmem:[%s1379_s1 + $0x50] sm:$0xff] }
  0x17   : > { %974 = vtanh.f32 %v228_v5  ;;  %v486_v5 = vld [vmem:[%s1379_s1 + $0x58] sm:$0xff] }
  0x18   : > { %976 = vtanh.f32 %v234_v6  ;;  %v918_v6 = vpack.c.bf16 %v484_v63, %v483_v62 }
  0x19   : > { %978 = vtanh.f32 %v229_v9  ;;  %v921_v9 = vpack.c.bf16 %v486_v5, %v485_v4 }
  0x1a   : > { %980 = vtanh.f32 %v235_v11  ;;  %919 = vmatpush3.bf16.msra.mxu0 %v918_v6  ;;  %933 = vmatpush3.bf16.msra.mxu1 %v918_v6 }
  0x1b   : > { %982 = vtanh.f32 %v236_v13  ;;  %920 = vmatprep.subr.bf16.mxu0 %v1014_v12  ;;  %v1017_v13 = vmov 0.0   ;;  %928 = vmatprep.subr.bf16.mxu1 %v1014_v12 }
  0x1c   : > { %v1096_v20 = vpop.eup %964  ;;  %984 = vtanh.f32 %v230_v14  ;;  %866 = vmatprep.mubr.msk.f32.mxu0 %vm1016_vm1, %v1017_v13  ;;  %887 = vmatprep.mubr.msk.f32.mxu1 %vm1016_vm1, %v1017_v13 }
  0x1d   : > { %v1098_v21 = vpop.eup %966  ;;  %v1101_v22 = vmul.f32 2.0, %v1096_v20  ;;  %986 = vtanh.f32 %v237_v17  ;;  %253 = vst.msk [vmem:[#allocation2 + $0x8] sm:$0xff] %vm251_vm0, %v1096_v20 }
  0x1e   : > { %v1113_v25 = vpop.eup %968  ;;  %v1116_v26 = vmul.f32 2.0, %v1098_v21  ;;  %988 = vtanh.f32 %v231_v19  ;;  %252 = vst.msk [vmem:[#allocation2] sm:$0xff] %vm251_vm0, %v1098_v21  ;;  %922 = vmatpush3.bf16.msra.mxu0 %v921_v9  ;;  %934 = vmatpush3.bf16.msra.mxu1 %v921_v9 }
  0x1f   : > { %v1120_v28 = vpop.eup %970  ;;  %v279_v29 = vmul.f32 %v1096_v20, %v1101_v22  ;;  %v1125_v30 = vmul.f32 2.0, %v1113_v25  ;;  %259 = vst.msk [vmem:[#allocation2 + $0x38] sm:$0xff] %vm251_vm0, %v1113_v25 }
  0x20   : > { %v1129_v31 = vpop.eup %972  ;;  %v278_v32 = vmul.f32 %v1098_v21, %v1116_v26  ;;  %v1134_v33 = vmul.f32 2.0, %v1120_v28  ;;  %254 = vst.msk [vmem:[#allocation2 + $0x10] sm:$0xff] %vm251_vm0, %v1120_v28 }
  0x21   : > { %v1138_v34 = vpop.eup %974  ;;  %v1140_v35 = vadd.f32 -1.0, %v279_v29  ;;  %v285_v36 = vmul.f32 %v1113_v25, %v1125_v30  ;;  %v1145_v37 = vmul.f32 2.0, %v1129_v31  ;;  %260 = vst.msk [vmem:[#allocation2 + $0x40] sm:$0xff] %vm251_vm0, %v1129_v31 }
  0x22   : > { %v1157_v40 = vpop.eup %976  ;;  %v788_v41 = vadd.f32 -1.0, %v278_v32  ;;  %v280_v42 = vmul.f32 %v1120_v28, %v1134_v33  ;;  %v1162_v43 = vmul.f32 2.0, %v1138_v34  ;;  %255 = vst.msk [vmem:[#allocation2 + $0x18] sm:$0xff] %vm251_vm0, %v1138_v34 }
  0x23   : > { %v1166_v45 = vpop.eup %978  ;;  %319 = vrot.lane.b32.xlu1 %v1140_v35, %s1015_s10  ;;  %v795_v46 = vadd.f32 -1.0, %v285_v36  ;;  %v286_v47 = vmul.f32 %v1129_v31, %v1145_v37  ;;  %v1173_v48 = vmul.f32 2.0, %v1157_v40  ;;  %261 = vst.msk [vmem:[#allocation2 + $0x48] sm:$0xff] %vm251_vm0, %v1157_v40  ;;  %v371_v10 = vmul.f32 %v1140_v35, %v1101_v22 }
  0x24   : > { %v1177_v49 = vpop.eup %980  ;;  %317 = vrot.lane.b32.xlu0 %v788_v41, %s1015_s10  ;;  %v790_v50 = vadd.f32 -1.0, %v280_v42  ;;  %v281_v51 = vmul.f32 %v1138_v34, %v1162_v43  ;;  %v1183_v52 = vmul.f32 2.0, %v1166_v45  ;;  %256 = vst.msk [vmem:[#allocation2 + $0x20] sm:$0xff] %vm251_vm0, %v1166_v45  ;;  %v370_v2 = vmul.f32 %v788_v41, %v1116_v26 }
  0x25   : > { %v1187_v53 = vpop.eup %982  ;;  %262 = vst.msk [vmem:[#allocation2 + $0x50] sm:$0xff] %vm251_vm0, %v1177_v49  ;;  %v796_v56 = vadd.f32 -1.0, %v286_v47  ;;  %v287_v57 = vmul.f32 %v1157_v40, %v1173_v48  ;;  %v275_v58 = vmul.f32 2.0, %v1177_v49  ;;  %v377_v8 = vmul.f32 %v795_v46, %v1125_v30 }
  0x26   : > { %v1192_v54 = vpop.eup %984  ;;  %263 = vst.msk [vmem:[#allocation2 + $0x58] sm:$0xff] %vm251_vm0, %v1187_v53  ;;  %v791_v60 = vadd.f32 -1.0, %v281_v51  ;;  %v282_v61 = vmul.f32 %v1166_v45, %v1183_v52  ;;  %v383_v11 = vsub.f32 %v370_v2, %v1098_v21  ;;  %v384_v16 = vsub.f32 %v371_v10, %v1096_v20 }
  0x27   : > { %v1197_v55 = vpop.eup %986  ;;  %331 = vrot.lane.b32.xlu1 %v795_v46, %s1015_s10  ;;  %257 = vst.msk [vmem:[#allocation2 + $0x28] sm:$0xff] %vm251_vm0, %v1192_v54  ;;  %v797_v0 = vadd.f32 -1.0, %v287_v57  ;;  %v288_v1 = vmul.f32 %v1177_v49, %v275_v58  ;;  %v390_v14 = vsub.f32 %v377_v8, %v1113_v25  ;;  %v378_v15 = vmul.f32 %v796_v56, %v1145_v37 }
  0x28   : > { %v1205_v59 = vpop.eup %988  ;;  %321 = vrot.lane.b32.xlu0 %v790_v50, %s1015_s10  ;;  %264 = vst.msk [vmem:[#allocation2 + $0x60] sm:$0xff] %vm251_vm0, %v1197_v55  ;;  %v792_v3 = vadd.f32 -1.0, %v282_v61  ;;  %v372_v17 = vmul.f32 %v790_v50, %v1134_v33  ;;  %v276_v19 = vmul.f32 2.0, %v1187_v53  ;;  %v373_v22 = vmul.f32 %v791_v60, %v1162_v43 }
  0x29   : > { %258 = vst.msk [vmem:[#allocation2 + $0x30] sm:$0xff] %vm251_vm0, %v1205_v59  ;;  %v798_v7 = vadd.f32 -1.0, %v288_v1  ;;  %v391_v12 = vsub.f32 %v378_v15, %v1129_v31  ;;  %v379_v18 = vmul.f32 %v797_v0, %v1173_v48  ;;  %v270_v23 = vmul.f32 2.0, %v1192_v54 }
  0x2a   : > { %v385_v21 = vsub.f32 %v372_v17, %v1120_v28  ;;  %v289_v25 = vmul.f32 %v1187_v53, %v276_v19  ;;  %v386_v26 = vsub.f32 %v373_v22, %v1138_v34  ;;  %v374_v27 = vmul.f32 %v792_v3, %v1183_v52 }
  0x2b   : > { %333 = vrot.lane.b32.xlu1 %v796_v56, %s1015_s10  ;;  %v392_v20 = vsub.f32 %v379_v18, %v1157_v40  ;;  %v380_v24 = vmul.f32 %v798_v7, %v275_v58  ;;  %v283_v29 = vmul.f32 %v1192_v54, %v270_v23  ;;  %v277_v31 = vmul.f32 2.0, %v1197_v55 }
  0x2c   : > { %323 = vrot.lane.b32.xlu0 %v791_v60, %s1015_s10  ;;  %v799_v30 = vadd.f32 -1.0, %v289_v25  ;;  %v387_v32 = vsub.f32 %v374_v27, %v1166_v45  ;;  %v271_v35 = vmul.f32 2.0, %v1205_v59 }
  0x2d   : > { %v393_v28 = vsub.f32 %v380_v24, %v1177_v49  ;;  %v793_v33 = vadd.f32 -1.0, %v283_v29  ;;  %v290_v36 = vmul.f32 %v1197_v55, %v277_v31 }
  0x2e   : > { %v381_v34 = vmul.f32 %v799_v30, %v276_v19  ;;  %v284_v38 = vmul.f32 %v1205_v59, %v271_v35 }
  0x2f   : > { %335 = vrot.lane.b32.xlu1 %v797_v0, %s1015_s10  ;;  %v375_v37 = vmul.f32 %v793_v33, %v270_v23  ;;  %v800_v40 = vadd.f32 -1.0, %v290_v36 }
  0x30   : > { %325 = vrot.lane.b32.xlu0 %v792_v3, %s1015_s10  ;;  %v394_v39 = vsub.f32 %v381_v34, %v1187_v53  ;;  %v794_v42 = vadd.f32 -1.0, %v284_v38 }
  0x31   : > { %v388_v41 = vsub.f32 %v375_v37, %v1192_v54  ;;  %v382_v43 = vmul.f32 %v800_v40, %v277_v31 }
  0x32   : > { %v376_v44 = vmul.f32 %v794_v42, %v271_v35 }
  0x33   : > { %337 = vrot.lane.b32.xlu1 %v798_v7, %s1015_s10  ;;  %v395_v45 = vsub.f32 %v382_v43, %v1197_v55 }
  0x34   : > { %409 = vrot.lane.b32.xlu0 %v383_v11, %s1018_s24  ;;  %v389_v46 = vsub.f32 %v376_v44, %v1205_v59 }
  0x37   : > { %423 = vrot.lane.b32.xlu1 %v390_v14, %s1018_s24 }
  0x38   : > { %411 = vrot.lane.b32.xlu0 %v384_v16, %s1018_s24 }
  0x3b   : > { %425 = vrot.lane.b32.xlu1 %v391_v12, %s1018_s24 }
  0x3c   : > { %413 = vrot.lane.b32.xlu0 %v385_v21, %s1018_s24 }
  0x3f   : > { %427 = vrot.lane.b32.xlu1 %v392_v20, %s1018_s24  ;;  %v801_v20 = vld [vmem:[%s1380_s2] ss:$0 sm:$0xff] }
  0x40   : > { %415 = vrot.lane.b32.xlu0 %v386_v26, %s1018_s24 }
  0x43   : > { %429 = vrot.lane.b32.xlu1 %v393_v28, %s1018_s24 }
  0x44   : > { %417 = vrot.lane.b32.xlu0 %v387_v32, %s1018_s24 }
  0x47   : > { %339 = vrot.lane.b32.xlu1 %v799_v30, %s1015_s10 }
  0x48   : > { %327 = vrot.lane.b32.xlu0 %v793_v33, %s1015_s10 }
  0x4b   : > { %431 = vrot.lane.b32.xlu1 %v394_v39, %s1018_s24 }
  0x4c   : > { %419 = vrot.lane.b32.xlu0 %v388_v41, %s1018_s24 }
  0x4f   : > { %341 = vrot.lane.b32.xlu1 %v800_v40, %s1015_s10 }
  0x50   : > { %329 = vrot.lane.b32.xlu0 %v794_v42, %s1015_s10 }
  0x53   : > { %433 = vrot.lane.b32.xlu1 %v395_v45, %s1018_s24 }
  0x54   : > { %421 = vrot.lane.b32.xlu0 %v389_v46, %s1018_s24 }
  0x95   : > { %v320_v47 = vpop.permute.xlu1 %319 }
  0x96   : > { %358 = vst.msk [vmem:[#allocation2 + $0x8] sm:$0xff] %vm356_vm2, %v320_v47  ;;  %v318_v48 = vpop.permute.xlu0 %317 }
  0x97   : > { %357 = vst.msk [vmem:[#allocation2] sm:$0xff] %vm356_vm2, %v318_v48 }
  0x99   : > { %v332_v49 = vpop.permute.xlu1 %331 }
  0x9a   : > { %364 = vst.msk [vmem:[#allocation2 + $0x38] sm:$0xff] %vm356_vm2, %v332_v49  ;;  %v322_v50 = vpop.permute.xlu0 %321 }
  0x9b   : > { %359 = vst.msk [vmem:[#allocation2 + $0x10] sm:$0xff] %vm356_vm2, %v322_v50 }
  0x9d   : > { %v334_v51 = vpop.permute.xlu1 %333 }
  0x9e   : > { %365 = vst.msk [vmem:[#allocation2 + $0x40] sm:$0xff] %vm356_vm2, %v334_v51  ;;  %v324_v52 = vpop.permute.xlu0 %323 }
  0x9f   : > { %360 = vst.msk [vmem:[#allocation2 + $0x18] sm:$0xff] %vm356_vm2, %v324_v52 }
  0xa1   : > { %v336_v53 = vpop.permute.xlu1 %335 }
  0xa2   : > { %366 = vst.msk [vmem:[#allocation2 + $0x48] sm:$0xff] %vm356_vm2, %v336_v53  ;;  %v326_v54 = vpop.permute.xlu0 %325 }
  0xa3   : > { %361 = vst.msk [vmem:[#allocation2 + $0x20] sm:$0xff] %vm356_vm2, %v326_v54 }
  0xa5   : > { %v338_v55 = vpop.permute.xlu1 %337 }
  0xa6   : > { %367 = vst.msk [vmem:[#allocation2 + $0x50] sm:$0xff] %vm356_vm2, %v338_v55  ;;  %v410_v56 = vpop.permute.xlu0 %409 }
  0xa7   : > { %449 = vst.msk [vmem:[#allocation2] sm:$0xff] %vm448_vm3, %v410_v56 }
  0xa9   : > { %v424_v57 = vpop.permute.xlu1 %423 }
  0xaa   : > { %456 = vst.msk [vmem:[#allocation2 + $0x38] sm:$0xff] %vm448_vm3, %v424_v57  ;;  %v412_v58 = vpop.permute.xlu0 %411 }
  0xab   : > { %450 = vst.msk [vmem:[#allocation2 + $0x8] sm:$0xff] %vm448_vm3, %v412_v58 }
  0xad   : > { %v426_v59 = vpop.permute.xlu1 %425 }
  0xae   : > { %457 = vst.msk [vmem:[#allocation2 + $0x40] sm:$0xff] %vm448_vm3, %v426_v59  ;;  %v414_v60 = vpop.permute.xlu0 %413  ;;  %v462_v61 = vld [vmem:[#allocation2] sm:$0xff] }
  0xaf   : > { %451 = vst.msk [vmem:[#allocation2 + $0x10] sm:$0xff] %vm448_vm3, %v414_v60  ;;  %867 = vmatmul.mubr.msk.f32.vlgmr.msra.gmra.mrb[0].mxu0 %vm494_vm4, %v462_v61 }
  0xb0   : > { %869 = vmatprep.mubr.msk.f32.mxu0 %vm1016_vm1, %v1017_v13 }
  0xb1   : > { %v428_v62 = vpop.permute.xlu1 %427  ;;  %v469_v63 = vld [vmem:[#allocation2 + $0x38] sm:$0xff] }
  0xb2   : > { %458 = vst.msk [vmem:[#allocation2 + $0x48] sm:$0xff] %vm448_vm3, %v428_v62  ;;  %v416_v0 = vpop.permute.xlu0 %415  ;;  %v463_v1 = vld [vmem:[#allocation2 + $0x8] sm:$0xff]  ;;  %888 = vmatmul.mubr.msk.f32.vlgmr.msra.gmra.mrb[0].mxu1 %vm494_vm4, %v469_v63 }
  0xb3   : > { %452 = vst.msk [vmem:[#allocation2 + $0x18] sm:$0xff] %vm448_vm3, %v416_v0  ;;  %870 = vmatmul.mubr.msk.f32.gmra.mrb[2].mxu0 %vm494_vm4, %v463_v1  ;;  %890 = vmatprep.mubr.msk.f32.mxu1 %vm1016_vm1, %v1017_v13 }
  0xb4   : > { %872 = vmatprep.mubr.msk.f32.mxu0 %vm1016_vm1, %v1017_v13 }
  0xb5   : > { %v430_v2 = vpop.permute.xlu1 %429  ;;  %v470_v3 = vld [vmem:[#allocation2 + $0x40] sm:$0xff] }
  0xb6   : > { %459 = vst.msk [vmem:[#allocation2 + $0x50] sm:$0xff] %vm448_vm3, %v430_v2  ;;  %v418_v4 = vpop.permute.xlu0 %417  ;;  %v464_v5 = vld [vmem:[#allocation2 + $0x10] sm:$0xff]  ;;  %891 = vmatmul.mubr.msk.f32.gmra.mrb[2].mxu1 %vm494_vm4, %v470_v3 }
  0xb7   : > { %453 = vst.msk [vmem:[#allocation2 + $0x20] sm:$0xff] %vm448_vm3, %v418_v4  ;;  %873 = vmatmul.mubr.msk.f32.gmra.mrb[4].mxu0 %vm494_vm4, %v464_v5  ;;  %893 = vmatprep.mubr.msk.f32.mxu1 %vm1016_vm1, %v1017_v13 }
  0xb8   : > { %875 = vmatprep.mubr.msk.f32.mxu0 %vm1016_vm1, %v1017_v13 }
  0xb9   : > { %v340_v6 = vpop.permute.xlu1 %339  ;;  %v471_v7 = vld [vmem:[#allocation2 + $0x48] sm:$0xff] }
  0xba   : > { %368 = vst.msk [vmem:[#allocation2 + $0x58] sm:$0xff] %vm356_vm2, %v340_v6  ;;  %v328_v8 = vpop.permute.xlu0 %327  ;;  %v465_v9 = vld [vmem:[#allocation2 + $0x18] sm:$0xff]  ;;  %894 = vmatmul.mubr.msk.f32.gmra.mrb[4].mxu1 %vm494_vm4, %v471_v7 }
  0xbb   : > { %362 = vst.msk [vmem:[#allocation2 + $0x28] sm:$0xff] %vm356_vm2, %v328_v8  ;;  %876 = vmatmul.mubr.msk.f32.gmra.mrb[6].mxu0 %vm494_vm4, %v465_v9  ;;  %896 = vmatprep.mubr.msk.f32.mxu1 %vm1016_vm1, %v1017_v13 }
  0xbc   : > { %878 = vmatprep.mubr.msk.f32.mxu0 %vm1016_vm1, %v1017_v13 }
  0xbd   : > { %v432_v10 = vpop.permute.xlu1 %431  ;;  %v472_v11 = vld [vmem:[#allocation2 + $0x50] sm:$0xff] }
  0xbe   : > { %460 = vst.msk [vmem:[#allocation2 + $0x58] sm:$0xff] %vm448_vm3, %v432_v10  ;;  %v420_v14 = vpop.permute.xlu0 %419  ;;  %v466_v15 = vld [vmem:[#allocation2 + $0x20] sm:$0xff]  ;;  %897 = vmatmul.mubr.msk.f32.gmra.mrb[6].mxu1 %vm494_vm4, %v472_v11 }
  0xbf   : > { %454 = vst.msk [vmem:[#allocation2 + $0x28] sm:$0xff] %vm448_vm3, %v420_v14  ;;  %879 = vmatmul.mubr.msk.f32.gmra.mrb[8].mxu0 %vm494_vm4, %v466_v15  ;;  %899 = vmatprep.mubr.msk.f32.mxu1 %vm1016_vm1, %v1017_v13 }
  0xc0   : > { %881 = vmatprep.mubr.msk.f32.mxu0 %vm1016_vm1, %v1017_v13 }
  0xc1   : > { %v342_v16 = vpop.permute.xlu1 %341 }
  0xc2   : > { %369 = vst.msk [vmem:[#allocation2 + $0x60] sm:$0xff] %vm356_vm2, %v342_v16  ;;  %v330_v17 = vpop.permute.xlu0 %329 }
  0xc3   : > { %363 = vst.msk [vmem:[#allocation2 + $0x30] sm:$0xff] %vm356_vm2, %v330_v17 }
  0xc5   : > { %v434_v12 = vpop.permute.xlu1 %433  ;;  %v473_v18 = vld [vmem:[#allocation2 + $0x58] sm:$0xff] }
  0xc6   : > { %461 = vst.msk [vmem:[#allocation2 + $0x60] sm:$0xff] %vm448_vm3, %v434_v12  ;;  %v422_v19 = vpop.permute.xlu0 %421  ;;  %v467_v21 = vld [vmem:[#allocation2 + $0x28] sm:$0xff]  ;;  %900 = vmatmul.mubr.msk.f32.gmra.mrb[8].mxu1 %vm494_vm4, %v473_v18 }
  0xc7   : > { %455 = vst.msk [vmem:[#allocation2 + $0x30] sm:$0xff] %vm448_vm3, %v422_v19  ;;  %882 = vmatmul.mubr.msk.f32.gmra.mrb[10].mxu0 %vm494_vm4, %v467_v21  ;;  %902 = vmatprep.mubr.msk.f32.mxu1 %vm1016_vm1, %v1017_v13 }
  0xc8   : > { %884 = vmatprep.mubr.msk.f32.mxu0 %vm1016_vm1, %v1017_v13 }
  0xcd   : > { %v474_v22 = vld [vmem:[#allocation2 + $0x60] sm:$0xff] }
  0xce   : > { %v468_v23 = vld [vmem:[#allocation2 + $0x30] sm:$0xff]  ;;  %903 = vmatmul.mubr.msk.f32.gmra.mrb[10].mxu1 %vm494_vm4, %v474_v22 }
  0xcf   : > { %885 = vmatmul.mubr.msk.f32.gmra.mrb[12].mxu0 %vm494_vm4, %v468_v23 }
 0x182   : > { %v600_v13 = vpop.f32.mrb[0].mxu0 }
 0x183   : > { %v601_v24 = vadd.f32 %v801_v20, %v600_v13  ;;  %v868_v25 = vpop.f32.mrb[1].mxu0 }
 0x185   : > { %664 = vst [vmem:[%s1354_s29] sm:$0xff] %v601_v24  ;;  %v635_v26 = vpop.f32.mrb[0].mxu1 }
 0x186   : > { %v605_v27 = vpop.f32.mrb[2].mxu0  ;;  %v636_v29 = vadd.f32 %v801_v20, %v635_v26  ;;  %v889_v28 = vpop.f32.mrb[1].mxu1 }
 0x187   : > { %v606_v30 = vadd.f32 %v801_v20, %v605_v27  ;;  %v871_v31 = vpop.f32.mrb[3].mxu0 }
 0x188   : > { %671 = vst [vmem:[%s1354_s29 + $0x38] sm:$0xff] %v636_v29 }
 0x189   : > { %665 = vst [vmem:[%s1354_s29 + $0x8] sm:$0xff] %v606_v30  ;;  %v640_v32 = vpop.f32.mrb[2].mxu1 }
 0x18a   : > { %v610_v33 = vpop.f32.mrb[4].mxu0  ;;  %v641_v35 = vadd.f32 %v801_v20, %v640_v32  ;;  %v892_v34 = vpop.f32.mrb[3].mxu1 }
 0x18b   : > { %v611_v36 = vadd.f32 %v801_v20, %v610_v33  ;;  %v874_v37 = vpop.f32.mrb[5].mxu0 }
 0x18c   : > { %672 = vst [vmem:[%s1354_s29 + $0x40] sm:$0xff] %v641_v35 }
 0x18d   : > { %666 = vst [vmem:[%s1354_s29 + $0x10] sm:$0xff] %v611_v36  ;;  %v645_v38 = vpop.f32.mrb[4].mxu1 }
 0x18e   : > { %v615_v39 = vpop.f32.mrb[6].mxu0  ;;  %v646_v40 = vadd.f32 %v801_v20, %v645_v38  ;;  %v895_v41 = vpop.f32.mrb[5].mxu1 }
 0x18f   : > { %v616_v42 = vadd.f32 %v801_v20, %v615_v39  ;;  %v877_v43 = vpop.f32.mrb[7].mxu0 }
 0x190   : > { %673 = vst [vmem:[%s1354_s29 + $0x48] sm:$0xff] %v646_v40 }
 0x191   : > { %667 = vst [vmem:[%s1354_s29 + $0x18] sm:$0xff] %v616_v42  ;;  %v650_v44 = vpop.f32.mrb[6].mxu1 }
 0x192   : > { %v620_v45 = vpop.f32.mrb[8].mxu0  ;;  %v651_v46 = vadd.f32 %v801_v20, %v650_v44  ;;  %v898_v47 = vpop.f32.mrb[7].mxu1 }
 0x193   : > { %v621_v48 = vadd.f32 %v801_v20, %v620_v45  ;;  %v880_v49 = vpop.f32.mrb[9].mxu0 }
 0x194   : > { %674 = vst [vmem:[%s1354_s29 + $0x50] sm:$0xff] %v651_v46 }
 0x195   : > { %668 = vst [vmem:[%s1354_s29 + $0x20] sm:$0xff] %v621_v48 }
 0x199   : > { %v655_v50 = vpop.f32.mrb[8].mxu1 }
 0x19a   : > { %v625_v51 = vpop.f32.mrb[10].mxu0  ;;  %v656_v52 = vadd.f32 %v801_v20, %v655_v50  ;;  %v901_v53 = vpop.f32.mrb[9].mxu1 }
 0x19b   : > { %v626_v54 = vadd.f32 %v801_v20, %v625_v51  ;;  %v883_v55 = vpop.f32.mrb[11].mxu0 }
 0x19c   : > { %675 = vst [vmem:[%s1354_s29 + $0x58] sm:$0xff] %v656_v52 }
 0x19d   : > { %669 = vst [vmem:[%s1354_s29 + $0x28] sm:$0xff] %v626_v54 }
 0x1a1   : > { %v660_v56 = vpop.f32.mrb[10].mxu1 }
 0x1a2   : > { %v630_v57 = vpop.f32.mrb[12].mxu0  ;;  %v661_v58 = vadd.f32 %v801_v20, %v660_v56  ;;  %v904_v59 = vpop.f32.mrb[11].mxu1 }
 0x1a3   : > { %v631_v60 = vadd.f32 %v801_v20, %v630_v57  ;;  %v886_v61 = vpop.f32.mrb[13].mxu0 }
 0x1a4   : > { %676 = vst [vmem:[%s1354_s29 + $0x60] sm:$0xff] %v661_v58 }
 0x1a5   : > { %670 = vst [vmem:[%s1354_s29 + $0x30] sm:$0xff] %v631_v60 }
 0x1a6 PF: > { %s13_s14 = sadd.s32 1, %s1012_s14   ;;  %s1382_s12 = smov %s1008_s13 }
 0x1a7   : > { %p10_p5 = scmp.ge.s32.totalorder %s13_s14, 4   ;;  %s1383_s13 = smov %s1385_s15 }
 0x1a9   :  { %12 = sbr.rel (!%p10_p5) target bundleno = 2 (0x2), region = 68 }

</bundles_post_ra>
